<compile_context>
chip_gen: v5e
topology: v5e:2x2
jax: 0.10.0
libtpu: 0.0.40
codegen_flags: <defaults>
</compile_context>

<pallas_src>
import functools

import jax
import jax.numpy as jnp
from jax.experimental import pallas as pl
from jax.experimental.pallas import tpu as pltpu


_N_POLAR = 32  # Newton-Schulz polar iterations per Procrustes step (quadratic convergence)


def _energy_kernel(x_ref, y_ref, exy_ref, exx_ref, eyy_ref, *, n_iter, n_polar, tol):
    # x: (1, C, n_x, D)   y: (1, C, n_y, D)  -- one batch element per grid step.
    x = x_ref[0]                                   # (C, n_x, D)
    y = y_ref[0]                                   # (C, n_y, D)
    C, n_x, D = x.shape
    n_y = y.shape[1]

    xf = x.reshape(C * n_x, D)
    yf = y.reshape(C * n_y, D)

    # Squared row norms, hoisted out of the fit loop (T is orthogonal, so
    # ||y @ T|| == ||y||).
    x2 = jnp.sum(x * x, axis=-1)                   # (C, n_x)
    y2 = jnp.sum(y * y, axis=-1)                   # (C, n_y)

    tol_sq = jnp.float32(tol * tol)

    def polar_factor(m):
        # Orthogonal polar factor Q = U @ V^T of m = U S V^T; the Procrustes
        # transform is T = V @ U^T = Q^T.
        # TODO(synk): batched SVD has no Pallas TPU equivalent; Newton-Schulz
        # polar iteration (matmul-only, MXU-friendly) is used instead. For
        # rank-deficient M its null-space completion differs from LAPACK's, but
        # that does not affect y @ T for y in the row space of Y (generic case).
        fro = jnp.sqrt(jnp.sum(m * m))
        a0 = m / jnp.maximum(fro, jnp.float32(1e-30))

        def ns_body(_, a):
            aat = jax.lax.dot_general(a, a, (((1,), (1,)), ((), ())),
                                      preferred_element_type=jnp.float32)   # a @ a^T
            a3 = jnp.dot(aat, a, preferred_element_type=jnp.float32)
            return 1.5 * a - 0.5 * a3

        return jax.lax.fori_loop(0, n_polar, ns_body, a0)

    # Initial gram with unit weights factorizes per class:
    #   sum_{c,i,j} x_ci y_cj^T = sum_c (sum_i x_ci)(sum_j y_cj)^T
    xs = jnp.sum(x, axis=1)                        # (C, D)
    ys = jnp.sum(y, axis=1)                        # (C, D)
    m0 = jax.lax.dot_general(xs, ys, (((0,), (0,)), ((), ())),
                             preferred_element_type=jnp.float32)            # (D, D)

    def irls_body(_, carry):
        m, _ = carry
        q = polar_factor(m)                        # Q ; T = Q^T
        # y @ T = y @ Q^T  (contract y's feature dim with Q's second dim).
        yt = jax.lax.dot_general(yf, q, (((1,), (1,)), ((), ())),
                                 preferred_element_type=jnp.float32)        # (C*n_y, D)
        yt = yt.reshape(C, n_y, D)
        # cross[c, i, j] = x_ci . (y_cj @ T)  -- per-class MXU matmul.
        cross = jax.lax.dot_general(x, yt, (((2,), (2,)), ((0,), (0,))),
                                    preferred_element_type=jnp.float32)     # (C, n_x, n_y)
        r2 = jnp.maximum(x2[:, :, None] + y2[:, None, :] - 2.0 * cross, 0.0)
        r = jnp.sqrt(r2)                           # pair distances ||x - y @ T||
        r_sum = jnp.sum(r)
        # w^2 = (1 / max(sqrt(r), tol))^2 == 1 / max(r, tol^2)
        w2 = 1.0 / jnp.maximum(r, tol_sq)
        # M_new = X^T diag(w^2) Y ; only one operand is scaled.
        wy = jax.lax.dot_general(w2, y, (((2,), (1,)), ((0,), (0,))),
                                 preferred_element_type=jnp.float32)        # (C, n_x, D)
        m_new = jax.lax.dot_general(xf, wy.reshape(C * n_x, D),
                                    (((0,), (0,)), ((), ())),
                                    preferred_element_type=jnp.float32)     # (D, D)
        return m_new, r_sum

    # e_xy reuses the residual sum of the last iteration (computed with the
    # final T) -- matches the reference, which projects Y with the returned T.
    _, exy_sum = jax.lax.fori_loop(0, n_iter, irls_body,
                                   (m0, jnp.zeros((), jnp.float32)))

    def pair_energy_sum(z, z2, n):
        # sum_c sum_{i<j} ||z_ci - z_cj|| == 0.5 * sum_c sum_{i != j} ||.||
        g = jax.lax.dot_general(z, z, (((2,), (2,)), ((0,), (0,))),
                                preferred_element_type=jnp.float32)         # (C, n, n)
        r2 = jnp.maximum(z2[:, :, None] + z2[:, None, :] - 2.0 * g, 0.0)
        ii = jax.lax.broadcasted_iota(jnp.int32, (C, n, n), 1)
        jj = jax.lax.broadcasted_iota(jnp.int32, (C, n, n), 2)
        r = jnp.where(ii == jj, 0.0, jnp.sqrt(r2))  # exact zeros on the diagonal
        return 0.5 * jnp.sum(r)

    exx_sum = pair_energy_sum(x, x2, n_x)
    eyy_sum = pair_energy_sum(y, y2, n_y)

    # One tiny store per batch per output (once per kernel invocation).
    exy_ref[0] = exy_sum.reshape(1, 1)
    exx_ref[0] = exx_sum.reshape(1, 1)
    eyy_ref[0] = eyy_sum.reshape(1, 1)


@functools.partial(jax.jit, static_argnames=("n_iter", "tol", "dim_matching", "reduction"))
def energy_metric(X, Y, n_iter=100, tol=1e-6, dim_matching="zero_pad", reduction="mean"):
    if X.ndim != 4 or Y.ndim != 4 or X.shape[:-2] != Y.shape[:-2]:
        raise ValueError(f"Expected matching 4D inputs, got {X.shape} and {Y.shape}")

    if X.shape[-1] != Y.shape[-1]:
        if dim_matching in (None, "none"):
            raise ValueError("Dimension mismatch with dim_matching disabled")
        elif dim_matching == "zero_pad":
            size_diff = Y.shape[-1] - X.shape[-1]
            if size_diff < 0:
                raise ValueError("zero_pad expects X dim <= Y dim")
            X = jnp.pad(X, ((0, 0), (0, 0), (0, 0), (0, size_diff)))
        else:
            raise NotImplementedError(dim_matching)

    X = X.astype(jnp.float32)
    Y = Y.astype(jnp.float32)
    B, C, n_x, D = X.shape
    n_y = Y.shape[2]

    kernel = functools.partial(_energy_kernel, n_iter=int(n_iter),
                               n_polar=_N_POLAR, tol=float(tol))

    exy_s, exx_s, eyy_s = pl.pallas_call(
        kernel,
        out_shape=(
            jax.ShapeDtypeStruct((B, 1, 1), jnp.float32),
            jax.ShapeDtypeStruct((B, 1, 1), jnp.float32),
            jax.ShapeDtypeStruct((B, 1, 1), jnp.float32),
        ),
        grid=(B,),
        in_specs=[
            pl.BlockSpec((1, C, n_x, D), lambda b: (b, 0, 0, 0)),
            pl.BlockSpec((1, C, n_y, D), lambda b: (b, 0, 0, 0)),
        ],
        out_specs=(
            pl.BlockSpec((1, 1, 1), lambda b: (b, 0, 0)),
            pl.BlockSpec((1, 1, 1), lambda b: (b, 0, 0)),
            pl.BlockSpec((1, 1, 1), lambda b: (b, 0, 0)),
        ),
        compiler_params=pltpu.CompilerParams(
            dimension_semantics=("parallel",),      # batch axis -> megacore sharding
            vmem_limit_bytes=32 * 1024 * 1024,      # blocks are KB-scale; safe on v5e/v6e/v7x
        ),
    )(X, Y)

    n_pairs = C * n_x * n_y
    e_xy = exy_s[:, 0, 0] / n_pairs
    # TODO(synk): like the reference, e_xx / e_yy are NaN when n_x == 1 or n_y == 1.
    e_xx = exx_s[:, 0, 0] / (C * n_x * (n_x - 1) / 2)
    e_yy = eyy_s[:, 0, 0] / (C * n_y * (n_y - 1) / 2)

    norms = jnp.sqrt(jnp.maximum(e_xy - 0.5 * (e_xx + e_yy), 0.0))

    if reduction == "mean":
        return jnp.mean(norms)
    elif reduction == "sum":
        return jnp.sum(norms)
    elif reduction in (None, "none"):
        return norms
    else:
        raise ValueError(f"Unrecognized reduction {reduction}")


if __name__ == "__main__":
    key = jax.random.PRNGKey(0)
    kx, ky = jax.random.split(key)
    # batch x class x repeats x activations (X gets zero-padded 24 -> 32 to match Y)
    X = jax.random.normal(kx, (2, 3, 4, 24), dtype=jnp.float32)
    Y = jax.random.normal(ky, (2, 3, 3, 32), dtype=jnp.float32)

    out = energy_metric(X, Y)
    jax.block_until_ready(out)
    print("KERNEL_OK")
</pallas_src>

<mosaic_0001>
module attributes {stable_mosaic.version = 11 : i64} {
  func.func @_energy_kernel(%arg0: i32, %arg1: memref<1x3x4x32xf32, #tpu.memory_space<vmem>>, %arg2: memref<1x3x3x32xf32, #tpu.memory_space<vmem>>, %arg3: memref<1x1x1xf32, #tpu.memory_space<vmem>>, %arg4: memref<1x1x1xf32, #tpu.memory_space<vmem>>, %arg5: memref<1x1x1xf32, #tpu.memory_space<vmem>>) attributes {dimension_semantics = [#tpu.dimension_semantics<parallel>], iteration_bounds = array<i64: 2>, scalar_prefetch = 0 : i64, scratch_operands = 0 : i64, tpu.core_type = #tpu.core_type<tc>, window_params = [{transform_indices = @transform_0, window_bounds = array<i64: 1, 3, 4, 32>}, {transform_indices = @transform_1, window_bounds = array<i64: 1, 3, 3, 32>}, {transform_indices = @transform_2, window_bounds = array<i64: 1, 1, 1>}, {transform_indices = @transform_3, window_bounds = array<i64: 1, 1, 1>}, {transform_indices = @transform_4, window_bounds = array<i64: 1, 1, 1>}]} {
    %c0 = arith.constant 0 : index
    %c0_0 = arith.constant 0 : index
    %c0_1 = arith.constant 0 : index
    %c0_2 = arith.constant 0 : index
    %0 = vector.load %arg1[%c0, %c0_0, %c0_1, %c0_2] : memref<1x3x4x32xf32, #tpu.memory_space<vmem>>, vector<1x3x4x32xf32>
    %1 = vector.shape_cast %0 : vector<1x3x4x32xf32> to vector<3x4x32xf32>
    %c0_3 = arith.constant 0 : index
    %c0_4 = arith.constant 0 : index
    %c0_5 = arith.constant 0 : index
    %c0_6 = arith.constant 0 : index
    %2 = vector.load %arg2[%c0_3, %c0_4, %c0_5, %c0_6] : memref<1x3x3x32xf32, #tpu.memory_space<vmem>>, vector<1x3x3x32xf32>
    %3 = vector.shape_cast %2 : vector<1x3x3x32xf32> to vector<3x3x32xf32>
    %4 = vector.shape_cast %1 : vector<3x4x32xf32> to vector<12x32xf32>
    %5 = vector.shape_cast %3 : vector<3x3x32xf32> to vector<9x32xf32>
    %6 = arith.mulf %1, %1 : vector<3x4x32xf32>
    %cst = arith.constant dense<0.000000e+00> : vector<3x4xf32>
    %7 = vector.multi_reduction <add>, %6, %cst [2] : vector<3x4x32xf32> to vector<3x4xf32>
    %8 = arith.mulf %3, %3 : vector<3x3x32xf32>
    %cst_7 = arith.constant dense<0.000000e+00> : vector<3x3xf32>
    %9 = vector.multi_reduction <add>, %8, %cst_7 [2] : vector<3x3x32xf32> to vector<3x3xf32>
    %cst_8 = arith.constant dense<0.000000e+00> : vector<3x32xf32>
    %10 = vector.multi_reduction <add>, %1, %cst_8 [1] : vector<3x4x32xf32> to vector<3x32xf32>
    %cst_9 = arith.constant dense<0.000000e+00> : vector<3x32xf32>
    %11 = vector.multi_reduction <add>, %3, %cst_9 [1] : vector<3x3x32xf32> to vector<3x32xf32>
    %cst_10 = arith.constant dense<0.000000e+00> : vector<32x32xf32>
    %12 = tpu.matmul %10, %11, %cst_10 {dimension_numbers = #tpu.dot_dimension_numbers<[0], [0], [1], [1], [0, 1, 1, 1], [], []>} : vector<3x32xf32>, vector<3x32xf32>, vector<32x32xf32> -> vector<32x32xf32>
    %cst_11 = arith.constant 9.99999996E-13 : f32
    %cst_12 = arith.constant 0.000000e+00 : f32
    %c0_i32 = arith.constant 0 : i32
    %c100_i32 = arith.constant 100 : i32
    %13 = arith.addi %c0_i32, %c100_i32 : i32
    %c1_i32 = arith.constant 1 : i32
    %14:2 = scf.for %arg6 = %c0_i32 to %13 step %c1_i32 iter_args(%arg7 = %12, %arg8 = %cst_12) -> (vector<32x32xf32>, f32)  : i32 {
      %71 = arith.mulf %arg7, %arg7 : vector<32x32xf32>
      %72 = vector.shape_cast %71 : vector<32x32xf32> to vector<1x32x32xf32>
      %cst_34 = arith.constant dense<0.000000e+00> : vector<1xf32>
      %73 = vector.multi_reduction <add>, %72, %cst_34 [1, 2] : vector<1x32x32xf32> to vector<1xf32>
      %74 = vector.shape_cast %73 : vector<1xf32> to vector<1x1x1xf32>
      %75 = vector.extract %74[0, 0, 0] : f32 from vector<1x1x1xf32>
      %76 = math.sqrt %75 : f32
      %cst_35 = arith.constant 1.000000e-30 : f32
      %77 = arith.maximumf %76, %cst_35 : f32
      %78 = vector.broadcast %77 : f32 to vector<32x32xf32>
      %79 = arith.divf %arg7, %78 : vector<32x32xf32>
      %c0_i32_36 = arith.constant 0 : i32
      %c32_i32 = arith.constant 32 : i32
      %80 = arith.addi %c0_i32_36, %c32_i32 : i32
      %c1_i32_37 = arith.constant 1 : i32
      %81 = scf.for %arg9 = %c0_i32_36 to %80 step %c1_i32_37 iter_args(%arg10 = %79) -> (vector<32x32xf32>)  : i32 {
        %cst_46 = arith.constant dense<0.000000e+00> : vector<32x32xf32>
        %107 = tpu.matmul %arg10, %arg10, %cst_46 {dimension_numbers = #tpu.dot_dimension_numbers<[1], [1], [0], [0], [0, 0, 1, 0], [], []>} : vector<32x32xf32>, vector<32x32xf32>, vector<32x32xf32> -> vector<32x32xf32>
        %cst_47 = arith.constant dense<0.000000e+00> : vector<32x32xf32>
        %108 = tpu.matmul %107, %arg10, %cst_47 {dimension_numbers = #tpu.dot_dimension_numbers<[1], [0], [0], [1], [0, 0, 1, 1], [], []>} : vector<32x32xf32>, vector<32x32xf32>, vector<32x32xf32> -> vector<32x32xf32>
        %cst_48 = arith.constant 1.500000e+00 : f32
        %109 = vector.broadcast %cst_48 : f32 to vector<32x32xf32>
        %110 = arith.mulf %109, %arg10 : vector<32x32xf32>
        %cst_49 = arith.constant 5.000000e-01 : f32
        %111 = vector.broadcast %cst_49 : f32 to vector<32x32xf32>
        %112 = arith.mulf %111, %108 : vector<32x32xf32>
        %113 = arith.subf %110, %112 : vector<32x32xf32>
        scf.yield %113 : vector<32x32xf32>
      }
      %cst_38 = arith.constant dense<0.000000e+00> : vector<9x32xf32>
      %82 = tpu.matmul %5, %81, %cst_38 {dimension_numbers = #tpu.dot_dimension_numbers<[1], [1], [0], [0], [0, 0, 1, 0], [], []>} : vector<9x32xf32>, vector<32x32xf32>, vector<9x32xf32> -> vector<9x32xf32>
      %83 = vector.shape_cast %82 : vector<9x32xf32> to vector<3x3x32xf32>
      %cst_39 = arith.constant dense<0.000000e+00> : vector<3x4x3xf32>
      %84 = tpu.matmul %1, %83, %cst_39 {dimension_numbers = #tpu.dot_dimension_numbers<[2], [2], [1], [1], [0, 0, 0, 1, 1, 1], [0], [0]>} : vector<3x4x32xf32>, vector<3x3x32xf32>, vector<3x4x3xf32> -> vector<3x4x3xf32>
      %85 = vector.shape_cast %7 : vector<3x4xf32> to vector<3x4x1xf32>
      %86 = vector.shape_cast %9 : vector<3x3xf32> to vector<3x1x3xf32>
      %87 = vector.broadcast %85 : vector<3x4x1xf32> to vector<3x4x3xf32>
      %88 = vector.broadcast %86 : vector<3x1x3xf32> to vector<3x4x3xf32>
      %89 = arith.addf %87, %88 : vector<3x4x3xf32>
      %cst_40 = arith.constant 2.000000e+00 : f32
      %90 = vector.broadcast %cst_40 : f32 to vector<3x4x3xf32>
      %91 = arith.mulf %90, %84 : vector<3x4x3xf32>
      %92 = arith.subf %89, %91 : vector<3x4x3xf32>
      %cst_41 = arith.constant 0.000000e+00 : f32
      %93 = vector.broadcast %cst_41 : f32 to vector<3x4x3xf32>
      %94 = arith.maximumf %92, %93 : vector<3x4x3xf32>
      %95 = math.sqrt %94 : vector<3x4x3xf32>
      %96 = vector.shape_cast %95 : vector<3x4x3xf32> to vector<1x3x4x3xf32>
      %cst_42 = arith.constant dense<0.000000e+00> : vector<1xf32>
      %97 = vector.multi_reduction <add>, %96, %cst_42 [1, 2, 3] : vector<1x3x4x3xf32> to vector<1xf32>
      %98 = vector.shape_cast %97 : vector<1xf32> to vector<1x1x1x1xf32>
      %99 = vector.extract %98[0, 0, 0, 0] : f32 from vector<1x1x1x1xf32>
      %100 = vector.broadcast %cst_11 : f32 to vector<3x4x3xf32>
      %101 = arith.maximumf %95, %100 : vector<3x4x3xf32>
      %cst_43 = arith.constant 1.000000e+00 : f32
      %102 = vector.broadcast %cst_43 : f32 to vector<3x4x3xf32>
      %103 = arith.divf %102, %101 : vector<3x4x3xf32>
      %cst_44 = arith.constant dense<0.000000e+00> : vector<3x4x32xf32>
      %104 = tpu.matmul %103, %3, %cst_44 {dimension_numbers = #tpu.dot_dimension_numbers<[2], [1], [1], [2], [0, 0, 0, 1, 1, 2], [0], [0]>} : vector<3x4x3xf32>, vector<3x3x32xf32>, vector<3x4x32xf32> -> vector<3x4x32xf32>
      %105 = vector.shape_cast %104 : vector<3x4x32xf32> to vector<12x32xf32>
      %cst_45 = arith.constant dense<0.000000e+00> : vector<32x32xf32>
      %106 = tpu.matmul %4, %105, %cst_45 {dimension_numbers = #tpu.dot_dimension_numbers<[0], [0], [1], [1], [0, 1, 1, 1], [], []>} : vector<12x32xf32>, vector<12x32xf32>, vector<32x32xf32> -> vector<32x32xf32>
      scf.yield %106, %99 : vector<32x32xf32>, f32
    }
    %cst_13 = arith.constant dense<0.000000e+00> : vector<3x4x4xf32>
    %15 = tpu.matmul %1, %1, %cst_13 {dimension_numbers = #tpu.dot_dimension_numbers<[2], [2], [1], [1], [0, 0, 0, 1, 1, 1], [0], [0]>} : vector<3x4x32xf32>, vector<3x4x32xf32>, vector<3x4x4xf32> -> vector<3x4x4xf32>
    %16 = vector.shape_cast %7 : vector<3x4xf32> to vector<3x4x1xf32>
    %17 = vector.shape_cast %7 : vector<3x4xf32> to vector<3x1x4xf32>
    %18 = vector.broadcast %16 : vector<3x4x1xf32> to vector<3x4x4xf32>
    %19 = vector.broadcast %17 : vector<3x1x4xf32> to vector<3x4x4xf32>
    %20 = arith.addf %18, %19 : vector<3x4x4xf32>
    %cst_14 = arith.constant 2.000000e+00 : f32
    %21 = vector.broadcast %cst_14 : f32 to vector<3x4x4xf32>
    %22 = arith.mulf %21, %15 : vector<3x4x4xf32>
    %23 = arith.subf %20, %22 : vector<3x4x4xf32>
    %cst_15 = arith.constant 0.000000e+00 : f32
    %24 = vector.broadcast %cst_15 : f32 to vector<3x4x4xf32>
    %25 = arith.maximumf %23, %24 : vector<3x4x4xf32>
    %26 = tpu.iota {dimensions = array<i32: 1>} : vector<3x4x4xi32>
    %27 = tpu.iota {dimensions = array<i32: 2>} : vector<3x4x4xi32>
    %28 = arith.cmpi eq, %26, %27 : vector<3x4x4xi32>
    %29 = math.sqrt %25 : vector<3x4x4xf32>
    %cst_16 = arith.constant 0.000000e+00 : f32
    %30 = vector.broadcast %cst_16 : f32 to vector<3x4x4xf32>
    %31 = arith.select %28, %30, %29 : vector<3x4x4xi1>, vector<3x4x4xf32>
    %32 = vector.shape_cast %31 : vector<3x4x4xf32> to vector<1x3x4x4xf32>
    %cst_17 = arith.constant dense<0.000000e+00> : vector<1xf32>
    %33 = vector.multi_reduction <add>, %32, %cst_17 [1, 2, 3] : vector<1x3x4x4xf32> to vector<1xf32>
    %34 = vector.shape_cast %33 : vector<1xf32> to vector<1x1x1x1xf32>
    %35 = vector.extract %34[0, 0, 0, 0] : f32 from vector<1x1x1x1xf32>
    %cst_18 = arith.constant 5.000000e-01 : f32
    %36 = arith.mulf %cst_18, %35 : f32
    %cst_19 = arith.constant dense<0.000000e+00> : vector<3x3x3xf32>
    %37 = tpu.matmul %3, %3, %cst_19 {dimension_numbers = #tpu.dot_dimension_numbers<[2], [2], [1], [1], [0, 0, 0, 1, 1, 1], [0], [0]>} : vector<3x3x32xf32>, vector<3x3x32xf32>, vector<3x3x3xf32> -> vector<3x3x3xf32>
    %38 = vector.shape_cast %9 : vector<3x3xf32> to vector<3x3x1xf32>
    %39 = vector.shape_cast %9 : vector<3x3xf32> to vector<3x1x3xf32>
    %40 = vector.broadcast %38 : vector<3x3x1xf32> to vector<3x3x3xf32>
    %41 = vector.broadcast %39 : vector<3x1x3xf32> to vector<3x3x3xf32>
    %42 = arith.addf %40, %41 : vector<3x3x3xf32>
    %cst_20 = arith.constant 2.000000e+00 : f32
    %43 = vector.broadcast %cst_20 : f32 to vector<3x3x3xf32>
    %44 = arith.mulf %43, %37 : vector<3x3x3xf32>
    %45 = arith.subf %42, %44 : vector<3x3x3xf32>
    %cst_21 = arith.constant 0.000000e+00 : f32
    %46 = vector.broadcast %cst_21 : f32 to vector<3x3x3xf32>
    %47 = arith.maximumf %45, %46 : vector<3x3x3xf32>
    %48 = tpu.iota {dimensions = array<i32: 1>} : vector<3x3x3xi32>
    %49 = tpu.iota {dimensions = array<i32: 2>} : vector<3x3x3xi32>
    %50 = arith.cmpi eq, %48, %49 : vector<3x3x3xi32>
    %51 = math.sqrt %47 : vector<3x3x3xf32>
    %cst_22 = arith.constant 0.000000e+00 : f32
    %52 = vector.broadcast %cst_22 : f32 to vector<3x3x3xf32>
    %53 = arith.select %50, %52, %51 : vector<3x3x3xi1>, vector<3x3x3xf32>
    %54 = vector.shape_cast %53 : vector<3x3x3xf32> to vector<1x3x3x3xf32>
    %cst_23 = arith.constant dense<0.000000e+00> : vector<1xf32>
    %55 = vector.multi_reduction <add>, %54, %cst_23 [1, 2, 3] : vector<1x3x3x3xf32> to vector<1xf32>
    %56 = vector.shape_cast %55 : vector<1xf32> to vector<1x1x1x1xf32>
    %57 = vector.extract %56[0, 0, 0, 0] : f32 from vector<1x1x1x1xf32>
    %cst_24 = arith.constant 5.000000e-01 : f32
    %58 = arith.mulf %cst_24, %57 : f32
    %59 = vector.broadcast %14#1 : f32 to vector<1x1xf32>
    %c0_25 = arith.constant 0 : index
    %c0_26 = arith.constant 0 : index
    %c0_27 = arith.constant 0 : index
    %60 = vector.load %arg3[%c0_25, %c0_26, %c0_27] : memref<1x1x1xf32, #tpu.memory_space<vmem>>, vector<1x1x1xf32>
    %61 = vector.shape_cast %60 : vector<1x1x1xf32> to vector<1x1xf32>
    %62 = vector.shape_cast %59 : vector<1x1xf32> to vector<1x1x1xf32>
    tpu.vector_store %arg3[%c0_25, %c0_26, %c0_27], %62 {strides = array<i32>} : memref<1x1x1xf32, #tpu.memory_space<vmem>>, vector<1x1x1xf32>,
    %63 = vector.broadcast %36 : f32 to vector<1x1xf32>
    %c0_28 = arith.constant 0 : index
    %c0_29 = arith.constant 0 : index
    %c0_30 = arith.constant 0 : index
    %64 = vector.load %arg4[%c0_28, %c0_29, %c0_30] : memref<1x1x1xf32, #tpu.memory_space<vmem>>, vector<1x1x1xf32>
    %65 = vector.shape_cast %64 : vector<1x1x1xf32> to vector<1x1xf32>
    %66 = vector.shape_cast %63 : vector<1x1xf32> to vector<1x1x1xf32>
    tpu.vector_store %arg4[%c0_28, %c0_29, %c0_30], %66 {strides = array<i32>} : memref<1x1x1xf32, #tpu.memory_space<vmem>>, vector<1x1x1xf32>,
    %67 = vector.broadcast %58 : f32 to vector<1x1xf32>
    %c0_31 = arith.constant 0 : index
    %c0_32 = arith.constant 0 : index
    %c0_33 = arith.constant 0 : index
    %68 = vector.load %arg5[%c0_31, %c0_32, %c0_33] : memref<1x1x1xf32, #tpu.memory_space<vmem>>, vector<1x1x1xf32>
    %69 = vector.shape_cast %68 : vector<1x1x1xf32> to vector<1x1xf32>
    %70 = vector.shape_cast %67 : vector<1x1xf32> to vector<1x1x1xf32>
    tpu.vector_store %arg5[%c0_31, %c0_32, %c0_33], %70 {strides = array<i32>} : memref<1x1x1xf32, #tpu.memory_space<vmem>>, vector<1x1x1xf32>,
    return
  }
  func.func @transform_0(%arg0: i32) -> (i32, i32, i32, i32) {
    %c0_i32 = arith.constant 0 : i32
    %c0_i32_0 = arith.constant 0 : i32
    %c0_i32_1 = arith.constant 0 : i32
    %c0_i32_2 = arith.constant 0 : i32
    return %arg0, %c0_i32, %c0_i32_0, %c0_i32_1 : i32, i32, i32, i32
  }
  func.func @transform_1(%arg0: i32) -> (i32, i32, i32, i32) {
    %c0_i32 = arith.constant 0 : i32
    %c0_i32_0 = arith.constant 0 : i32
    %c0_i32_1 = arith.constant 0 : i32
    %c0_i32_2 = arith.constant 0 : i32
    return %arg0, %c0_i32, %c0_i32_0, %c0_i32_1 : i32, i32, i32, i32
  }
  func.func @transform_2(%arg0: i32) -> (i32, i32, i32) {
    %c0_i32 = arith.constant 0 : i32
    %c0_i32_0 = arith.constant 0 : i32
    %c0_i32_1 = arith.constant 0 : i32
    return %arg0, %c0_i32, %c0_i32_0 : i32, i32, i32
  }
  func.func @transform_3(%arg0: i32) -> (i32, i32, i32) {
    %c0_i32 = arith.constant 0 : i32
    %c0_i32_0 = arith.constant 0 : i32
    %c0_i32_1 = arith.constant 0 : i32
    return %arg0, %c0_i32, %c0_i32_0 : i32, i32, i32
  }
  func.func @transform_4(%arg0: i32) -> (i32, i32, i32) {
    %c0_i32 = arith.constant 0 : i32
    %c0_i32_0 = arith.constant 0 : i32
    %c0_i32_1 = arith.constant 0 : i32
    return %arg0, %c0_i32, %c0_i32_0 : i32, i32, i32
  }
}

</mosaic_0001>

<bundles_post_ra>
// kernel: energy_metric.1
= control target key start
LH: loop header
LB: loop body
LE: loop exit
PB: predicated region body
PF: predicated region fallthrough
CT: control target
= control target key end

     0   :  { %s1808_s15 = smov 0   ;;  %s2205_s0 = inlined_call_operand.vmem [shape: f32[2,3,4,32], index: 0, kind: input, shape index: {}]   ;;  %s2206_s1 = inlined_call_operand.vmem [shape: f32[2,3,3,32], index: 1, kind: input, shape index: {}]   ;;  %s2207_s2 = inlined_call_operand.vmem [shape: f32[2,1,1], index: 2, kind: output, shape index: {0}]   ;;  %s2208_s3 = inlined_call_operand.vmem [shape: f32[2,1,1], index: 3, kind: output, shape index: {1}]   ;;  %s2209_s4 = inlined_call_operand.vmem [shape: f32[2,1,1], index: 4, kind: output, shape index: {2}]  }
   0x1 LB: > { %s1490_s16 = sadd.s32 4294967295, %s1740_s15   ;;  %p1494_p0 = scmp.ge.s32.totalorder %s1740_s15, 1  ;;  %s1740_s15 = sphi %s1808_s15, %s15_s15  }
   0x2   : > { %p177_p1 = scmp.lt.s32.totalorder %s1740_s15, 3 }
   0x4   : > { %p178_p2 = pnand %p1494_p0, %p177_p1 }
   0x5   : > { %p212_p3 = scmp.lt.s32.totalorder (!%p178_p2), %s1490_s16, 1  ;;  %s1915_s7 = smov (!%p178_p2), 0  }
   0x6   : > { %181 = sbr.rel (%p178_p2) target bundleno = 1800 (0x708), region = 28 }
   0xb   : > { %s2216_s16 = smov (!%p212_p3, %s1490_s16), 1  ;;  %vm249_vm0 = vcmask 257024   ;;  %vm262_vm1 = vcmask 256000   ;;  %vm317_vm2 = vcmask 1041409   ;;  %vm319_vm3 = vcmask 1042434  }
   0xc   : > { %s1564_s17 = smul.u32 12, %s2216_s16  ;;  %s224_s20 = scalar_lea.vmem %s2207_s2, %s2216_s16  ;;  %vm372_vm4 = vcmask 1042432   ;;  %vm359_vm5 = vcmask 23552  }
   0xd   : > { %s227_s23 = scalar_lea.vmem %s2208_s3, %s2216_s16  ;;  %s230_s26 = scalar_lea.vmem %s2209_s4, %s2216_s16 }
   0xe   : > { %s216_s29 = scalar_lea.vmem %s2205_s0, %s1564_s17  ;;  %s221_s6 = scalar_lea.vmem %s2206_s1, %s1564_s17 }
   0xf   : > { %v1837_v0 = vld [vmem:[%s216_s29] sm:$0xf]  ;;  %v1839_v1 = vld [vmem:[%s216_s29 + $0x4] sm:$0xf]  ;;  %v1841_v2 = vld [vmem:[%s216_s29 + $0x8] sm:$0xf] }
  0x10   : > { %v1843_v3 = vld [vmem:[%s221_s6] sm:$0x7]  ;;  %v1845_v4 = vld [vmem:[%s221_s6 + $0x4] sm:$0x7]  ;;  %v272_v5 = vsel %vm249_vm0, %v1837_v0, 0.0  ;;  %v279_v6 = vsel %vm249_vm0, %v1839_v1, 0.0  ;;  %v247_v58 = vmul.f32 %v1839_v1, %v1839_v1  ;;  %v248_v61 = vmul.f32 %v1841_v2, %v1841_v2 }
  0x11   : > { %v240_v7 = vrot.slane %v1843_v3, 1  ;;  %v241_v8 = vrot.slane %v1843_v3, 2  ;;  %v242_v9 = vrot.slane %v1845_v4, 1  ;;  %v243_v10 = vrot.slane %v1845_v4, 2  ;;  %v1855_v11 = vld [vmem:[%s221_s6 + $0x8] sm:$0x7] }
  0x12   : > { %v273_v12 = vrot.slane %v272_v5, 4  ;;  %v280_v13 = vrot.slane %v279_v6, 4  ;;  %v286_v14 = vsel %vm249_vm0, %v1841_v2, 0.0  ;;  %v244_v15 = vrot.slane %v1855_v11, 1 }
  0x13   : > { %v287_v16 = vrot.slane %v286_v14, 4  ;;  %v245_v17 = vrot.slane %v1855_v11, 2  ;;  %v293_v18 = vsel %vm262_vm1, %v1843_v3, 0.0  ;;  %v300_v19 = vsel %vm262_vm1, %v1845_v4, 0.0 }
  0x14   : > { %v274_v20 = vadd.f32 %v273_v12, %v272_v5  ;;  %v281_v21 = vadd.f32 %v280_v13, %v279_v6  ;;  %v294_v22 = vrot.slane %v293_v18, 4  ;;  %v301_v23 = vrot.slane %v300_v19, 4 }
  0x15   : > { %v288_v24 = vadd.f32 %v287_v16, %v286_v14  ;;  %v307_v25 = vsel %vm262_vm1, %v1855_v11, 0.0  ;;  %v253_v59 = vsel %vm249_vm0, %v247_v58, 0.0  ;;  %v259_v60 = vmul.f32 %v1843_v3, %v1843_v3 }
  0x16   : > { %v275_v26 = vrot.slane %v274_v20, 2  ;;  %v282_v27 = vrot.slane %v281_v21, 2  ;;  %v295_v28 = vadd.f32 %v294_v22, %v293_v18  ;;  %v302_v29 = vadd.f32 %v301_v23, %v300_v19  ;;  %254 = vadd.xlane.f32.xlu1 %v253_v59 }
  0x17   : > { %v289_v30 = vrot.slane %v288_v24, 2  ;;  %v308_v31 = vrot.slane %v307_v25, 4  ;;  %v246_v62 = vmul.f32 %v1837_v0, %v1837_v0  ;;  %v263_v63 = vsel %vm262_vm1, %v259_v60, 0.0 }
  0x18   : > { %v276_v32 = vadd.f32 %v275_v26, %v274_v20  ;;  %v283_v33 = vadd.f32 %v282_v27, %v281_v21  ;;  %v296_v34 = vrot.slane %v295_v28, 2  ;;  %v303_v35 = vrot.slane %v302_v29, 2  ;;  %264 = vadd.xlane.f32.xlu2 %v263_v63 }
  0x19   : > { %v290_v36 = vadd.f32 %v289_v30, %v288_v24  ;;  %v309_v37 = vadd.f32 %v308_v31, %v307_v25  ;;  %v250_v5 = vsel %vm249_vm0, %v246_v62, 0.0  ;;  %v260_v6 = vmul.f32 %v1845_v4, %v1845_v4 }
  0x1a   : > { %v277_v38 = vrot.slane %v276_v32, 1  ;;  %v284_v39 = vrot.slane %v283_v33, 1  ;;  %v297_v40 = vadd.f32 %v296_v34, %v295_v28  ;;  %v304_v41 = vadd.f32 %v303_v35, %v302_v29 }
  0x1b   : > { %v291_v42 = vrot.slane %v290_v36, 1  ;;  %v310_v43 = vrot.slane %v309_v37, 2  ;;  %v256_v12 = vsel %vm249_vm0, %v248_v61, 0.0  ;;  %v266_v14 = vsel %vm262_vm1, %v260_v6, 0.0 }
  0x1c   : > { %v278_v44 = vadd.f32 %v277_v38, %v276_v32  ;;  %v285_v45 = vadd.f32 %v284_v39, %v283_v33  ;;  %v298_v46 = vrot.slane %v297_v40, 1  ;;  %v305_v47 = vrot.slane %v304_v41, 1 }
  0x1d   : > { %v292_v48 = vadd.f32 %v291_v42, %v290_v36  ;;  %v311_v49 = vadd.f32 %v310_v43, %v309_v37  ;;  %v261_v16 = vmul.f32 %v1855_v11, %v1855_v11 }
  0x1e   : > { %v318_v50 = vsel %vm317_vm2, %v285_v45, %v278_v44  ;;  %v299_v51 = vadd.f32 %v298_v46, %v297_v40  ;;  %v306_v52 = vadd.f32 %v305_v47, %v304_v41  ;;  %257 = vadd.xlane.f32.xlu1 %v256_v12 }
  0x1f   : > { %v320_v53 = vsel %vm319_vm3, %v292_v48, %v318_v50  ;;  %v312_v54 = vrot.slane %v311_v49, 1  ;;  %v269_v18 = vsel %vm262_vm1, %v261_v16, 0.0 }
  0x20   : > { %322 = vxpose.xlu0.b32.start.end [1/1] (short) (narrow) %v320_v53, 32  ;;  %v357_v55 = vsel %vm317_vm2, %v306_v52, %v299_v51  ;;  %267 = vadd.xlane.f32.xlu2 %v266_v14 }
  0x21   : > { %v313_v56 = vadd.f32 %v312_v54, %v311_v49 }
  0x23   : > { %v358_v57 = vsel %vm319_vm3, %v313_v56, %v357_v55 }
  0x24   : > { %1497 = vmatpush.msk.msra.mxu0 %vm372_vm4, %v358_v57  ;;  %1551 = vmatpush.msk.msra.mxu1 %vm372_vm4, %v358_v57 }
  0x25   : > { %1552 = vmatpush.msk.msra.mxu2 %vm372_vm4, %v358_v57  ;;  %1553 = vmatpush.msk.msra.mxu3 %vm372_vm4, %v358_v57 }
  0x26   : > { %270 = vadd.xlane.f32.xlu1 %v269_v18 }
  0x89   : > { %v1895_v22 = vpop.xlane.xlu1 %254 }
  0x8b   : > { %v1897_v23 = vpop.xlane.xlu2 %264 }
  0x91   : > { %v1899_v24 = vpop.xlane.xlu1 %257 }
  0x93   : > { %v1901_v25 = vpop.xlane.xlu2 %267 }
  0x99   : > { %v1903_v26 = vpop.xlane.xlu1 %270 }
  0xa9   : > { %251 = vadd.xlane.f32.xlu0 %v250_v5 }
  0xc4   : > { %v338_v13 = vpop.trf.xlu0 }
  0xc5   : > { %1498 = vmatmul.msk.f32.vlgmr.msra.gmra.mxu0 %vm359_vm5, %v338_v13 }
  0xcc   : > { %v339_v19 = vpop.trf.xlu0 }
  0xcd   : > { %1499 = vmatmul.msk.f32.vlgmr.msra.gmra.mxu1 %vm359_vm5, %v339_v19 }
  0xd4   : > { %v340_v20 = vpop.trf.xlu0 }
  0xd5   : > { %1500 = vmatmul.msk.f32.vlgmr.msra.gmra.mxu2 %vm359_vm5, %v340_v20 }
  0xdc   : > { %v341_v21 = vpop.trf.xlu0 }
  0xdd   : > { %1501 = vmatmul.msk.f32.vlgmr.msra.gmra.mxu3 %vm359_vm5, %v341_v21 }
 0x11c   : > { %v1905_v27 = vpop.xlane.xlu0 %251 }
 0x142   : > { %v392_v28 = vpop.f32.mrf.mxu0  }
 0x14a   : > { %v395_v29 = vpop.f32.mrf.mxu1  }
 0x158   : > { %v398_v30 = vpop.f32.mrf.mxu2  }
 0x160   : > { %v401_v31 = vpop.f32.mrf.mxu3  }
 0x161 LB: >> { %v415_v32 = vmul.f32 %v1756_v28, %v1756_v28  ;;  %v416_v33 = vmul.f32 %v1752_v29, %v1752_v29  ;;  %v417_v34 = vmul.f32 %v1748_v30, %v1748_v30  ;;  %v418_v35 = vmul.f32 %v1744_v31, %v1744_v31  ;;  %s1782_s10 = smov 1e-30   ;;  %s1939_s12 = smov 0   ;;  %s1760_s7 = sphi %s1915_s7, %s409_s7   ;;  %v1756_v28 = vphi %v392_v28, %v1022_v28   ;;  %v1752_v29 = vphi %v395_v29, %v1025_v29   ;;  %v1748_v30 = vphi %v398_v30, %v1028_v30   ;;  %v1744_v31 = vphi %v401_v31, %v1031_v31  }
 0x162   : >> { %vm419_vm6 = vcmask 261120  }
 0x163   : >> { %v420_v36 = vsel %vm419_vm6, %v415_v32, 0.0  ;;  %v421_v37 = vsel %vm419_vm6, %v416_v33, 0.0  ;;  %v423_v38 = vsel %vm419_vm6, %v417_v34, 0.0  ;;  %v425_v40 = vsel %vm419_vm6, %v418_v35, 0.0 }
 0x164   : >> { %v422_v39 = vadd.f32 %v421_v37, %v420_v36 }
 0x166   : >> { %v424_v41 = vadd.f32 %v423_v38, %v422_v39 }
 0x168   : >> { %v426_v42 = vadd.f32 %v425_v40, %v424_v41 }
 0x16a   : >> { %427 = vadd.xlane.f32.xlu0 %v426_v42 }
 0x1dd   : >> { %v428_v43 = vpop.xlane.xlu0 %427 }
 0x1de   : >> { %v429_v44 = vrot.slane %v428_v43, 4 }
 0x1e0   : >> { %v430_v45 = vadd.f32 %v429_v44, %v428_v43 }
 0x1e2   : >> { %v431_v46 = vrot.slane %v430_v45, 2 }
 0x1e4   : >> { %v432_v47 = vadd.f32 %v431_v46, %v430_v45 }
 0x1e6   : >> { %v433_v48 = vrot.slane %v432_v47, 1 }
 0x1e8   : >> { %v434_v49 = vadd.f32 %v433_v48, %v432_v47 }
 0x1ea   : >> { %1565 = vpush %v434_v49 }
 0x21b   : >> { %s1566_s8 = spop %1565 }
 0x21c   : >> { %v436_v50 = vstv %s1566_s8 }
 0x21d   : >> { %1666 = vrsqrt.f32 %v436_v50  ;;  %vm444_vm7 = vcmp.eq.f32.partialorder %v436_v50, inf  ;;  %v447_v58 = vand.u32 2147483648, %v436_v50  ;;  %vm446_vm8 = vcmp.eq.f32.partialorder %v436_v50, 0.0 }
 0x223   : >> { %v1667_v51 = vpop.eup %1666 }
 0x224   : >> { %v438_v52 = vmul.f32 %v1667_v51, %v436_v50 }
 0x226   : >> { %v439_v53 = vmul.f32 %v1667_v51, %v438_v52 }
 0x228   : >> { %v440_v54 = vmul.f32 0.5, %v439_v53 }
 0x22a   : >> { %v441_v55 = vsub.f32 1.5, %v440_v54 }
 0x22c   : >> { %v442_v56 = vmul.f32 %v1667_v51, %v441_v55 }
 0x22e   : >> { %v443_v57 = vmul.f32 %v442_v56, %v436_v50 }
 0x230   : >> { %v445_v59 = vsel %vm444_vm7, %v436_v50, %v443_v57 }
 0x231   : >> { %v448_v60 = vsel %vm446_vm8, %v447_v58, %v445_v59 }
 0x232   : >> { %1567 = vpush %v448_v60 }
 0x263   : >> { %s1568_s9 = spop %1567 }
 0x264   : >> { %s450_s11 = smax.f32 %s1782_s10, %s1568_s9 }
 0x265   : >> { %v451_v61 = vstv %s450_s11 }
 0x266   : >> { %1668 = vrcp.f32 %v451_v61  ;;  %v463_v6 = vand.u32 2147483648, %v451_v61  ;;  %v461_v13 = vand.u32 2147483647, %v451_v61  ;;  %vm457_vm10 = vweird.f32 %v451_v61 }
 0x268   : >> { %v464_v16 = vor.u32 1.1754944e-38, %v463_v6  ;;  %vm462_vm12 = vcmp.eq.f32.partialorder %v461_v13, 8.507059e+37 }
 0x26c   : >> { %v1669_v62 = vpop.eup %1668 }
 0x26d   : >> { %v453_v63 = vmul.f32 %v1669_v62, %v451_v61  ;;  %vm458_vm9 = vweird.f32 %v1669_v62 }
 0x26e   : >> { %vm459_vm11 = vmor %vm457_vm10, %vm458_vm9 }
 0x26f   : >> { %v454_v5 = vsub.f32 1.0, %v453_v63 }
 0x271   : >> { %v455_v12 = vmul.f32 %v1669_v62, %v454_v5 }
 0x273   : >> { %v456_v14 = vadd.f32 %v1669_v62, %v455_v12 }
 0x275   : >> { %v460_v18 = vsel %vm459_vm11, %v1669_v62, %v456_v14 }
 0x276   : >> { %v465_v19 = vsel %vm462_vm12, %v464_v16, %v460_v18 }
 0x277   : >> { %v466_v20 = vmul.f32 %v1756_v28, %v465_v19   ;;  %v467_v21 = vmul.f32 %v1752_v29, %v465_v19   ;;  %v468_v32 = vmul.f32 %v1748_v30, %v465_v19   ;;  %v469_v33 = vmul.f32 %v1744_v31, %v465_v19  }
 0x279   : >> { %v1774_v34 = vmov %v466_v20  }
 0x27a LB: >>> { %1502 = vmatpush.xpose.msk.msra.mxu0 %vm419_vm6, %v1764_v33  ;;  %1554 = vmatpush.xpose.msk.msra.mxu2 %vm419_vm6, %v1764_v33  ;;  %v562_v35 = vmul.f32 1.5, %v1776_v34  ;;  %v563_v39 = vmul.f32 1.5, %v1772_v21  ;;  %v564_v43 = vmul.f32 1.5, %v1768_v32  ;;  %v565_v47 = vmul.f32 1.5, %v1764_v33  ;;  %s475_s12 = sadd.s32 1, %s1780_s12   ;;  %s1780_s12 = sphi %s1939_s12, %s475_s12   ;;  %v1776_v34 = vphi %v1774_v34, %v1775_v34   ;;  %v1772_v21 = vphi %v467_v21, %v2212_v21   ;;  %v1768_v32 = vphi %v468_v32, %v2211_v32   ;;  %v1764_v33 = vphi %v469_v33, %v2210_v33  }
 0x27b   : >>> { %545 = vmatpush.msra.mxu1 %v1764_v33  ;;  %1558 = vmatpush.msra.mxu3 %v1764_v33  ;;  %p472_p4 = scmp.ge.s32.totalorder %s475_s12, 32  }
 0x27c   : >> { %574 = vst [vmem:[#allocation1] ss:$9 sm:$0xff] (%p472_p4), %v1843_v3  ;;  %v736_v13 = vlaneseq (%p472_p4)  ;;  %vm799_vm3 = vcmask (%p472_p4), 19456   ;;  %s409_s7 = sadd.s32 (%p472_p4), 1, %s1760_s7  }
 0x27d   : >>> { %546 = vmatpush.msra.mxu1 %v1768_v32  ;;  %1559 = vmatpush.msra.mxu3 %v1768_v32  ;;  %576 = vst [vmem:[#allocation1 + $0x1] ss:$9 sm:$0xff] (%p472_p4), %v240_v7  ;;  %p406_p5 = scmp.ge.s32.totalorder (%p472_p4), %s409_s7, 100  }
 0x27e   : >>> { %1503 = vmatpush.xpose.msk.msra.mxu0 %vm419_vm6, %v1768_v32  ;;  %1555 = vmatpush.xpose.msk.msra.mxu2 %vm419_vm6, %v1768_v32  ;;  %578 = vst [vmem:[#allocation1 + $0x2] ss:$9 sm:$0xff] (%p472_p4), %v241_v8  ;;  %v2012_v14 = vand.u32 (%p472_p4), 127, %v736_v13 }
 0x27f   : >>> { %547 = vmatpush.msra.mxu1 %v1772_v21  ;;  %1560 = vmatpush.msra.mxu3 %v1772_v21  ;;  %580 = vst [vmem:[#allocation1 + $0x3] ss:$9 sm:$0xff] (%p472_p4), %v1845_v4 }
 0x280   : >> { %582 = vst [vmem:[#allocation1 + $0x4] ss:$9 sm:$0xff] (%p472_p4), %v242_v9  ;;  %v2016_v16 = vperm.slane (%p472_p4), %v1897_v23, %v2012_v14 }
 0x281   : >>> { %548 = vmatpush.msra.mxu1 %v1776_v34  ;;  %1561 = vmatpush.msra.mxu3 %v1776_v34  ;;  %584 = vst [vmem:[#allocation1 + $0x5] ss:$9 sm:$0xff] (%p472_p4), %v243_v10 }
 0x282   : >>> { %1504 = vmatpush.xpose.msk.msra.mxu0 %vm419_vm6, %v1772_v21  ;;  %1556 = vmatpush.xpose.msk.msra.mxu2 %vm419_vm6, %v1772_v21  ;;  %586 = vst [vmem:[#allocation1 + $0x6] ss:$9 sm:$0xff] (%p472_p4), %v1855_v11  ;;  %v751_v18 = vadd.f32 (%p472_p4), %v2016_v16, %v1905_v27 }
 0x283   : >> { %588 = vst [vmem:[#allocation1 + $0x7] ss:$9 sm:$0xff] (%p472_p4), %v244_v15 }
 0x286   : >>> { %1505 = vmatpush.xpose.msk.msra.mxu0 %vm419_vm6, %v1776_v34  ;;  %1557 = vmatpush.xpose.msk.msra.mxu2 %vm419_vm6, %v1776_v34 }
 0x289   : >>> { %1506 = vmatmul.msk.f32.vlgmr.msra.gmra.mxu0 %vm419_vm6, %v1776_v34  ;;  %1508 = vmatmul.msk.f32.vlgmr.msra.gmra.mxu2 %vm419_vm6, %v1768_v32 }
 0x28a   : >> { %v589_v51 = vld [vmem:[#allocation1] sm:$0xff] (%p472_p4) }
 0x28b   : >> { %590 = vst [vmem:[#allocation1] ss:$9 sm:$0xff] (%p472_p4), %v245_v17 }
 0x291   : >>> { %1507 = vmatmul.msk.f32.gmra.mxu0 %vm419_vm6, %v1772_v21  ;;  %1509 = vmatmul.msk.f32.gmra.mxu2 %vm419_vm6, %v1764_v33 }
 0x292   : >> { %v591_v52 = vld [vmem:[#allocation1] sm:$0xff] (%p472_p4) }
 0x306   : >>> { %v509_v28 = vpop.f32.mrf.mxu0 }
 0x307   : >>> { %1510 = vmatmul.msk.f32.vlgmr.msra.gmra.mxu1 %vm419_vm6, %v509_v28 }
 0x308   : >> { %1526 = vmatpush.msk.msra.mxu1 (%p472_p4), %vm372_vm4, %v1843_v3 }
 0x30a   : >> { %1528 = vmatpush.msk.msrb.mxu1 (%p472_p4), %vm372_vm4, %v1845_v4 }
 0x30c   : >>> { %v515_v30 = vpop.f32.mrf.mxu2 }
 0x30e   : >>> { %v512_v29 = vpop.f32.mrf.mxu0 }
 0x30f   : >>> { %1511 = vmatmul.msk.f32.vlgmr.msra.gmra.mxu3 %vm419_vm6, %v512_v29 }
 0x314   : >>> { %v518_v31 = vpop.f32.mrf.mxu2 }
 0x317   : >>> { %1512 = vmatmul.msk.f32.gmra.mxu3 %vm419_vm6, %v515_v30 }
 0x31f   : >>> { %1513 = vmatmul.msk.f32.gmra.mxu3 %vm419_vm6, %v518_v31 }
 0x384   : >>> { %v550_v36 = vpop.f32.mrf.mxu1 }
 0x385   : >>> { %v566_v37 = vmul.f32 0.5, %v550_v36 }
 0x387   : >>> { %v570_v38 = vsub.f32 %v562_v35, %v566_v37   ;;  %v2028_v37 = vperm.slane (%p472_p4), %v1903_v26, %v2012_v14 }
 0x389   : >>> { %v1775_v34 = vmov %v570_v38  }
 0x392   : >>> { %v553_v40 = vpop.f32.mrf.mxu3 }
 0x393   : >>> { %v567_v41 = vmul.f32 0.5, %v553_v40  ;;  %v753_v40 = vadd.f32 (%p472_p4), %v2028_v37, %v1899_v24 }
 0x395   : >>> { %v571_v42 = vsub.f32 %v563_v39, %v567_v41  }
 0x397   : >>> { %v2212_v21 = vmov %v571_v42 }
 0x39a   : >>> { %v556_v44 = vpop.f32.mrf.mxu3 }
 0x39b   : >>> { %v568_v45 = vmul.f32 0.5, %v556_v44 }
 0x39d   : >>> { %v572_v46 = vsub.f32 %v564_v43, %v568_v45  }
 0x39f   : >>> { %v2211_v32 = vmov %v572_v46 }
 0x3a2   : >>> { %v559_v48 = vpop.f32.mrf.mxu3 }
 0x3a3   : >>> { %v569_v49 = vmul.f32 0.5, %v559_v48  ;;  %474 = sbr.rel (!%p472_p4) target bundleno = 634 (0x27a), region = 116 }
 0x3a5   : >>> { %v573_v50 = vsub.f32 %v565_v47, %v569_v49  }
 0x3a7   : >>> { %v2210_v33 = vmov %v573_v50  ;;  %1514 = vmatpush.xpose.msk.msra.mxu0 (%p472_p4), %vm419_vm6, %v573_v50 }
 0x3a8   : >> { %v2022_v33 = vperm.slane %v1901_v25, %v2012_v14  ;;  %v1109_v7 = vperm.slane (%p406_p5), %v1905_v27, %v2012_v14 }
 0x3aa   : >> { %v752_v34 = vadd.f32 %v2022_v33, %v1895_v22 }
 0x3ab   : >> { %1515 = vmatpush.xpose.msk.msra.mxu0 %vm419_vm6, %v572_v46 }
 0x3af   : >> { %1516 = vmatpush.xpose.msk.msra.mxu0 %vm419_vm6, %v571_v42 }
 0x3b3   : >> { %1517 = vmatpush.xpose.msk.msra.mxu0 %vm419_vm6, %v570_v38 }
 0x3b6   : >> { %1518 = vmatmul.msk.f32.vlgmr.msra.gmra.mxu0 %vm419_vm6, %v589_v51 }
 0x3b7   : > { %1537 = vmatpush.xpose.msk.msra.mxu0 (%p406_p5), %vm419_vm6, %v1837_v0 }
 0x3bb   : > { %1545 = vmatpush.xpose.msk.msrb.mxu0 (%p406_p5), %vm419_vm6, %v1845_v4 }
 0x3be   : >> { %1519 = vmatmul.msk.f32.gmra.mxu0 %vm419_vm6, %v591_v52 }
 0x3c6   : > { %1538 = vmatmul.msk.f32.vlgmr.msra.gmra.mxu0 (%p406_p5), %vm419_vm6, %v1837_v0 }
 0x3ce   : > { %1546 = vmatmul.msk.f32.vlgmr.msrb.gmra.mxu0 (%p406_p5), %vm419_vm6, %v1845_v4  ;;  %v1111_v4 = vperm.slane (%p406_p5), %v1899_v24, %v2012_v14 }
 0x433   : >> { %v625_v53 = vpop.f32.mrf.mxu0 }
 0x434   : >> { %v633_v54 = vrot.slane %v625_v53, 1  ;;  %v634_v55 = vrot.slane %v625_v53, 2  ;;  %640 = vst [vmem:[#allocation1] ss:$9 sm:$0xff] %v625_v53  ;;  %v635_v56 = vrot.slane %v625_v53, 3  ;;  %v636_v57 = vrot.slane %v625_v53, 4 }
 0x435   : >> { %v637_v59 = vrot.slane %v625_v53, 5  ;;  %v638_v60 = vrot.slane %v625_v53, 6  ;;  %v639_v61 = vrot.slane %v625_v53, 7 }
 0x436   : >> { %642 = vst [vmem:[#allocation1 + $0x1] ss:$9 sm:$0xff] %v633_v54 }
 0x437   : >> { %644 = vst [vmem:[#allocation1 + $0x2] ss:$9 sm:$0xff] %v634_v55 }
 0x43b   : >> { %v628_v62 = vpop.f32.mrf.mxu0 }
 0x43e   : >> { %v645_v58 = vld [vmem:[#allocation1] sm:$0xff] }
 0x43f   : >> { %671 = vst [vmem:[#allocation1] ss:$9 sm:$0xff] %v635_v56  ;;  %1520 = vmatpush.xpose.msk.msra.mxu3 %vm419_vm6, %v645_v58 }
 0x440   : >> { %673 = vst [vmem:[#allocation1 + $0x1] ss:$9 sm:$0xff] %v636_v57 }
 0x441   : >> { %675 = vst [vmem:[#allocation1 + $0x2] ss:$9 sm:$0xff] %v637_v59 }
 0x442   : >> { %1521 = vmatmul.msk.f32.vlgmr.msra.gmra.mxu3 %vm419_vm6, %v1837_v0 }
 0x448   : >> { %v676_v63 = vld [vmem:[#allocation1] sm:$0xff] }
 0x449   : >> { %702 = vst [vmem:[#allocation1] ss:$9 sm:$0xff] %v638_v60  ;;  %1522 = vmatpush.xpose.msk.msra.mxu2 %vm419_vm6, %v676_v63 }
 0x44a   : >> { %704 = vst [vmem:[#allocation1 + $0x1] ss:$9 sm:$0xff] %v639_v61 }
 0x44b   : >> { %706 = vst [vmem:[#allocation1 + $0x2] ss:$9 sm:$0xff] %v628_v62 }
 0x44c   : >> { %941 = vst [vmem:[#allocation1 + $0x10] ss:$2 sm:$0xff] %v1841_v2  ;;  %1523 = vmatmul.msk.f32.vlgmr.msra.gmra.mxu2 %vm419_vm6, %v1839_v1 }
 0x452   : >> { %v707_v5 = vld [vmem:[#allocation1] sm:$0xff] }
 0x453   : >> { %1524 = vmatpush.xpose.msk.msrb.mxu3 %vm419_vm6, %v707_v5  ;;  %937 = vst [vmem:[#allocation1] ss:$2 sm:$0xff] %v1837_v0  ;;  %v943_v12 = vld.sshfl [vmem:[#allocation1 + $0x10] sm:$0xff pattern:$0x75316420]  ;;  %v1110_v0 = vperm.slane (%p406_p5), %v1895_v22, %v2012_v14 }
 0x454   : >> { %939 = vst [vmem:[#allocation1 + $0x1] ss:$2 sm:$0xff] %v1839_v1 }
 0x455   : > { %v1123_v8 = vadd.f32 (%p406_p5), %v1110_v0, %v1895_v22 }
 0x456   : >> { %1525 = vmatmul.msk.f32.vlgmr.msrb.gmra.mxu3 %vm419_vm6, %v1841_v2 }
 0x457   : >> { %1530 = vmatpush.msk.msra.mxu3 %vm372_vm4, %v1855_v11 }
 0x45b   : >> { %v942_v6 = vld.sshfl [vmem:[#allocation1] sm:$0xff pattern:$0x75316420] }
 0x45c   : >> { %946 = vxpose.xlu0.b32.start [1/2] (short) (narrow) %v942_v6, 32 }
 0x464   : >> { %947 = vxpose.xlu0.b32.end [2/2] (short) (narrow) %v943_v12, 32 }
 0x4c5   : >> { %v668_v19 = vpop.f32.mrf.mxu3 }
 0x4c6   : >> { %v754_v20 = vmul.f32 2.0, %v668_v19 }
 0x4c8   : >> { %v757_v21 = vsub.f32 %v751_v18, %v754_v20 }
 0x4ca   : >> { %v760_v32 = vmax.f32 %v757_v21, 0.0 }
 0x4cc   : >> { %1670 = vrsqrt.f32 %v760_v32  ;;  %vm770_vm13 = vcmp.eq.f32.partialorder %v760_v32, inf  ;;  %v773_v50 = vand.u32 2147483648, %v760_v32  ;;  %vm772_vm14 = vcmp.eq.f32.partialorder %v760_v32, 0.0 }
 0x4cf   : >> { %v699_v28 = vpop.f32.mrf.mxu2 }
 0x4d0   : >> { %v755_v29 = vmul.f32 2.0, %v699_v28 }
 0x4d2   : >> { %v1671_v30 = vpop.eup %1670  ;;  %v758_v31 = vsub.f32 %v752_v34, %v755_v29 }
 0x4d3   : >> { %v764_v35 = vmul.f32 %v1671_v30, %v760_v32 }
 0x4d4   : >> { %v761_v36 = vmax.f32 %v758_v31, 0.0 }
 0x4d5   : >> { %v765_v38 = vmul.f32 %v1671_v30, %v764_v35 }
 0x4d6   : >> { %1672 = vrsqrt.f32 %v761_v36  ;;  %vm782_vm15 = vcmp.eq.f32.partialorder %v761_v36, inf  ;;  %v785_v62 = vand.u32 2147483648, %v761_v36  ;;  %vm784_vm0 = vcmp.eq.f32.partialorder %v761_v36, 0.0 }
 0x4d7   : >> { %v766_v39 = vmul.f32 0.5, %v765_v38 }
 0x4d9   : >> { %v730_v41 = vpop.f32.mrf.mxu3  ;;  %v767_v42 = vsub.f32 1.5, %v766_v39 }
 0x4da   : >> { %v756_v43 = vmul.f32 2.0, %v730_v41 }
 0x4db   : >> { %v768_v44 = vmul.f32 %v1671_v30, %v767_v42 }
 0x4dc   : >> { %v1673_v45 = vpop.eup %1672  ;;  %v759_v46 = vsub.f32 %v753_v40, %v756_v43 }
 0x4dd   : >> { %v769_v47 = vmul.f32 %v768_v44, %v760_v32  ;;  %v776_v48 = vmul.f32 %v1673_v45, %v761_v36 }
 0x4de   : >> { %v762_v49 = vmax.f32 %v759_v46, 0.0 }
 0x4df   : >> { %v771_v51 = vsel %vm770_vm13, %v760_v32, %v769_v47  ;;  %v777_v52 = vmul.f32 %v1673_v45, %v776_v48 }
 0x4e0   : >> { %v774_v53 = vsel %vm772_vm14, %v773_v50, %v771_v51  ;;  %1674 = vrsqrt.f32 %v762_v49  ;;  %vm794_vm9 = vcmp.eq.f32.partialorder %v762_v49, inf  ;;  %v797_v39 = vand.u32 2147483648, %v762_v49 }
 0x4e1   : >> { %v814_v54 = vmax.f32 %v774_v53, 1e-12  ;;  %v778_v55 = vmul.f32 0.5, %v777_v52  ;;  %vm796_vm10 = vcmp.eq.f32.partialorder %v762_v49, 0.0  ;;  %v800_v42 = vsel %vm799_vm3, %v774_v53, 0.0 }
 0x4e3   : >> { %1676 = vrcp.f32 %v814_v54  ;;  %v779_v56 = vsub.f32 1.5, %v778_v55  ;;  %v828_v21 = vand.u32 2147483648, %v814_v54  ;;  %v826_v28 = vand.u32 2147483647, %v814_v54 }
 0x4e4   : >> { %vm822_vm2 = vweird.f32 %v814_v54 }
 0x4e5   : >> { %v780_v58 = vmul.f32 %v1673_v45, %v779_v56  ;;  %v829_v31 = vor.u32 1.1754944e-38, %v828_v21  ;;  %vm827_vm8 = vcmp.eq.f32.partialorder %v826_v28, 8.507059e+37 }
 0x4e6   : >> { %v1675_v57 = vpop.eup %1674 }
 0x4e7   : >> { %v788_v59 = vmul.f32 %v1675_v57, %v762_v49  ;;  %v781_v60 = vmul.f32 %v780_v58, %v761_v36 }
 0x4e9   : >> { %v1677_v61 = vpop.eup %1676  ;;  %v789_v63 = vmul.f32 %v1675_v57, %v788_v59  ;;  %v783_v6 = vsel %vm782_vm15, %v761_v36, %v781_v60 }
 0x4ea   : >> { %v818_v5 = vmul.f32 %v1677_v61, %v814_v54  ;;  %v786_v12 = vsel %vm784_vm0, %v785_v62, %v783_v6  ;;  %vm823_vm1 = vweird.f32 %v1677_v61 }
 0x4eb   : >> { %v790_v18 = vmul.f32 0.5, %v789_v63  ;;  %v815_v20 = vmax.f32 %v786_v12, 1e-12  ;;  %vm824_vm7 = vmor %vm822_vm2, %vm823_vm1  ;;  %v801_v38 = vsel %vm799_vm3, %v786_v12, 0.0 }
 0x4ec   : >> { %v819_v19 = vsub.f32 1.0, %v818_v5  ;;  %v802_v45 = vadd.f32 %v801_v38, %v800_v42 }
 0x4ed   : >> { %v791_v32 = vsub.f32 1.5, %v790_v18  ;;  %1678 = vrcp.f32 %v815_v20  ;;  %v843_v52 = vand.u32 2147483648, %v815_v20  ;;  %v841_v55 = vand.u32 2147483647, %v815_v20 }
 0x4ee   : >> { %v820_v34 = vmul.f32 %v1677_v61, %v819_v19  ;;  %vm837_vm12 = vweird.f32 %v815_v20 }
 0x4ef   : >> { %v792_v29 = vmul.f32 %v1675_v57, %v791_v32  ;;  %v844_v53 = vor.u32 1.1754944e-38, %v843_v52  ;;  %vm842_vm14 = vcmp.eq.f32.partialorder %v841_v55, 8.507059e+37 }
 0x4f0   : >> { %v821_v30 = vadd.f32 %v1677_v61, %v820_v34 }
 0x4f1   : >> { %v793_v35 = vmul.f32 %v792_v29, %v762_v49 }
 0x4f2   : >> { %v825_v36 = vsel %vm824_vm7, %v1677_v61, %v821_v30  ;;  %vm989_vm7 = vcmask 97280  }
 0x4f3   : >> { %v830_v40 = vsel %vm827_vm8, %v829_v31, %v825_v36  ;;  %v795_v41 = vsel %vm794_vm9, %v762_v49, %v793_v35  ;;  %v1679_v43 = vpop.eup %1678  ;;  %vm1176_vm8 = vcmask (%p406_p5), 27648  }
 0x4f4   : >> { %1527 = vmatmul.msk.f32.vlgmr.msra.gmra.mxu1 %vm359_vm5, %v830_v40  ;;  %v798_v44 = vsel %vm796_vm10, %v797_v39, %v795_v41  ;;  %v833_v48 = vmul.f32 %v1679_v43, %v815_v20  ;;  %vm838_vm11 = vweird.f32 %v1679_v43 }
 0x4f5   : >> { %v803_v46 = vsel %vm799_vm3, %v798_v44, 0.0  ;;  %v816_v47 = vmax.f32 %v798_v44, 1e-12  ;;  %vm839_vm13 = vmor %vm837_vm12, %vm838_vm11  ;;  %vm1002_vm3 = vcmask 1043456   ;;  %v1124_v44 = vadd.f32 (%p406_p5), %v1111_v4, %v1899_v24 }
 0x4f6   : >> { %v804_v50 = vadd.f32 %v803_v46, %v802_v45  ;;  %v834_v51 = vsub.f32 1.0, %v833_v48  ;;  %v1271_v46 = vadd.f32 (%p406_p5), %v2022_v33, %v1901_v25 }
 0x4f7   : >> { %1680 = vrcp.f32 %v816_v47  ;;  %v858_v61 = vand.u32 2147483648, %v816_v47  ;;  %v856_v63 = vand.u32 2147483647, %v816_v47  ;;  %vm852_vm0 = vweird.f32 %v816_v47 }
 0x4f8   : >> { %805 = vadd.xlane.f32.xlu1 %v804_v50  ;;  %v835_v54 = vmul.f32 %v1679_v43, %v834_v51 }
 0x4f9   : >> { %v859_v6 = vor.u32 1.1754944e-38, %v858_v61  ;;  %vm857_vm2 = vcmp.eq.f32.partialorder %v856_v63, 8.507059e+37 }
 0x4fa   : >> { %v836_v49 = vadd.f32 %v1679_v43, %v835_v54 }
 0x4fc   : >> { %v840_v57 = vsel %vm839_vm13, %v1679_v43, %v836_v49  ;;  %vm1321_vm13 = vcmask (%p406_p5), 18432  }
 0x4fd   : >> { %v1681_v56 = vpop.eup %1680  ;;  %v845_v58 = vsel %vm842_vm14, %v844_v53, %v840_v57 }
 0x4fe   : >> { %v848_v59 = vmul.f32 %v1681_v56, %v816_v47  ;;  %1529 = vmatmul.msk.f32.vlgmr.msrb.gmra.mxu1 %vm359_vm5, %v845_v58  ;;  %vm853_vm15 = vweird.f32 %v1681_v56  ;;  %v1272_v47 = vadd.f32 (%p406_p5), %v2028_v37, %v1903_v26 }
 0x4ff   : >> { %vm854_vm1 = vmor %vm852_vm0, %vm853_vm15 }
 0x500   : >> { %v849_v60 = vsub.f32 1.0, %v848_v59  ;;  %v962_v35 = vpop.trf.xlu0  ;;  %v1135_v59 = vshrl.u32 (%p406_p5), %v736_v13, 7 }
 0x502   : >> { %v850_v62 = vmul.f32 %v1681_v56, %v849_v60  ;;  %vm2112_vm4 = vcmp.eq.s32.totalorder (%p406_p5), %v1135_v59, %v2012_v14 }
 0x504   : >> { %v851_v5 = vadd.f32 %v1681_v56, %v850_v62 }
 0x506   : >> { %v855_v12 = vsel %vm854_vm1, %v1681_v56, %v851_v5 }
 0x507   : >> { %v860_v18 = vsel %vm857_vm2, %v859_v6, %v855_v12 }
 0x508   : >> { %1531 = vmatmul.msk.f32.vlgmr.msra.gmra.mxu3 %vm359_vm5, %v860_v18  ;;  %v963_v38 = vpop.trf.xlu0 }
 0x509   : > { %1543 = vmatpush.xpose.msk.msra.mxu3 (%p406_p5), %vm419_vm6, %v1843_v3 }
 0x510   : >> { %v964_v39 = vpop.trf.xlu0  ;;  %1544 = vmatmul.msk.f32.vlgmr.msra.gmra.mxu3 (%p406_p5), %vm419_vm6, %v1843_v3 }
 0x518   : >> { %v965_v42 = vpop.trf.xlu0 }
 0x56b   : >> { %v806_v19 = vpop.xlane.xlu1 %805 }
 0x56c   : >> { %v807_v20 = vrot.slane %v806_v19, 4 }
 0x56e   : >> { %v808_v21 = vadd.f32 %v807_v20, %v806_v19 }
 0x570   : >> { %v809_v32 = vrot.slane %v808_v21, 2 }
 0x571   : >> { %v884_v34 = vpop.f32.mrf.mxu1 }
 0x572   : >> { %981 = vst [vmem:[#allocation1] ss:$2 sm:$0xff] %v884_v34  ;;  %v810_v28 = vadd.f32 %v809_v32, %v808_v21 }
 0x574   : >> { %v811_v29 = vrot.slane %v810_v28, 1 }
 0x576   : >> { %v812_v30 = vadd.f32 %v811_v29, %v810_v28 }
 0x578   : >> { %1569 = vpush %v812_v30 }
 0x57b   : >> { %v909_v31 = vpop.f32.mrf.mxu1 }
 0x57c   : >> { %983 = vst [vmem:[#allocation1 + $0x1] ss:$2 sm:$0xff] %v909_v31 }
 0x583   : >> { %v986_v41 = vld.sshfl [vmem:[#allocation1] sm:$0xff pattern:$0x75316420] }
 0x58b   : >> { %v934_v36 = vpop.f32.mrf.mxu3 }
 0x58c   : >> { %985 = vst [vmem:[#allocation1 + $0x10] ss:$2 sm:$0xff] %v934_v36 }
 0x593   : >> { %v987_v40 = vld.sshfl [vmem:[#allocation1 + $0x10] sm:$0xff pattern:$0x75316420]  ;;  %v1211_v45 = vpop.f32.mrf.mxu3 (%p406_p5) }
 0x594   : >> { %1532 = vmatpush.msk.msra.mxu1 %vm1002_vm3, %v987_v40  ;;  %1562 = vmatpush.msk.msrb.mxu2 %vm1002_vm3, %v987_v40  ;;  %v1273_v50 = vmul.f32 (%p406_p5), 2.0, %v1211_v45 }
 0x596   : >> { %1020 = vmatpush.msra.mxu1 %v986_v41  ;;  %1563 = vmatpush.msrb.mxu2 %v986_v41 }
 0x597   : >> { %1533 = vmatmul.msk.f32.vlgmr.msra.gmra.mxu1 %vm989_vm7, %v962_v35  ;;  %1535 = vmatmul.msk.f32.vlgmr.msrb.gmra.mxu2 %vm989_vm7, %v964_v39 }
 0x598   : > { %1539 = vmatpush.xpose.msk.msra.mxu1 (%p406_p5), %vm419_vm6, %v1839_v1  ;;  %1541 = vmatpush.xpose.msk.msra.mxu2 (%p406_p5), %vm419_vm6, %v1841_v2 }
 0x59c   : > { %1547 = vmatpush.xpose.msk.msrb.mxu1 (%p406_p5), %vm419_vm6, %v1855_v11 }
 0x59f   : >> { %1534 = vmatmul.msk.f32.gmra.mxu1 %vm989_vm7, %v963_v38  ;;  %1536 = vmatmul.msk.f32.gmra.mxu2 %vm989_vm7, %v965_v42  ;;  %vm1338_vm7 = vcmask (%p406_p5), 0  }
 0x5a7   : > { %1540 = vmatmul.msk.f32.vlgmr.msra.gmra.mxu1 (%p406_p5), %vm419_vm6, %v1839_v1  ;;  %1542 = vmatmul.msk.f32.vlgmr.msra.gmra.mxu2 (%p406_p5), %vm419_vm6, %v1841_v2  ;;  %v1122_v1 = vadd.f32 (%p406_p5), %v1109_v7, %v1905_v27  ;;  %v1055_v2 = vpop.f32.mrf.mxu0 (%p406_p5)  ;;  %v1270_v27 = vadd.f32 (%p406_p5), %v2016_v16, %v1897_v23 }
 0x5a8   : > { %v1125_v10 = vmul.f32 (%p406_p5), 2.0, %v1055_v2 }
 0x5a9   : >> { %s2038_s13 = spop %1569  ;;  %v1276_v23 = vsub.f32 (%p406_p5), %v1270_v27, %v1273_v50 }
 0x5aa   : > { %v1128_v15 = vsub.f32 (%p406_p5), %v1122_v1, %v1125_v10 }
 0x5ab   : > { %v2098_v56 = vmax.f32 (%p406_p5), %v1276_v23, 0.0 }
 0x5ad   : > { %vm1289_vm14 = vcmp.eq.f32.partialorder (%p406_p5), %v2098_v56, inf  ;;  %vm1291_vm15 = vcmp.eq.f32.partialorder (%p406_p5), %v2098_v56, 0.0 }
 0x5af   : > { %1548 = vmatmul.msk.f32.vlgmr.msrb.gmra.mxu1 (%p406_p5), %vm419_vm6, %v1855_v11  ;;  %v2083_v11 = vmax.f32 (%p406_p5), %v1128_v15, 0.0  ;;  %v1233_v51 = vpop.f32.mrf.mxu0 (%p406_p5) }
 0x5b0   : > { %v1274_v24 = vmul.f32 (%p406_p5), 2.0, %v1233_v51 }
 0x5b1   : > { %1682 = vrsqrt.f32 (%p406_p5), %v2083_v11  ;;  %vm1144_vm5 = vcmp.eq.f32.partialorder (%p406_p5), %v2083_v11, inf  ;;  %vm1146_vm6 = vcmp.eq.f32.partialorder (%p406_p5), %v2083_v11, 0.0  ;;  %v1147_v32 = vand.u32 (%p406_p5), 2147483648, %v2083_v11 }
 0x5b2   : > { %v1277_v16 = vsub.f32 (%p406_p5), %v1271_v46, %v1274_v24  ;;  %v1292_v46 = vand.u32 (%p406_p5), 2147483648, %v2098_v56 }
 0x5b4   : > { %v2100_v33 = vmax.f32 (%p406_p5), %v1277_v16, 0.0 }
 0x5b6   : > { %vm1301_vm0 = vcmp.eq.f32.partialorder (%p406_p5), %v2100_v33, inf  ;;  %vm1303_vm1 = vcmp.eq.f32.partialorder (%p406_p5), %v2100_v33, 0.0 }
 0x5b7   : > { %v1683_v25 = vpop.eup (%p406_p5), %1682 }
 0x5b8   : > { %v1138_v57 = vmul.f32 (%p406_p5), %v1683_v25, %v2083_v11 }
 0x5ba   : > { %v1139_v60 = vmul.f32 (%p406_p5), %v1683_v25, %v1138_v57 }
 0x5bc   : > { %v1140_v62 = vmul.f32 (%p406_p5), 0.5, %v1139_v60 }
 0x5be   : > { %v1141_v12 = vsub.f32 (%p406_p5), 1.5, %v1140_v62 }
 0x5c0   : > { %v1142_v21 = vmul.f32 (%p406_p5), %v1683_v25, %v1141_v12 }
 0x614   : >> { %v1022_v28 = vpop.f32.mrf.mxu1  }
 0x61a   : >> { %v1028_v30 = vpop.f32.mrf.mxu2  }
 0x61c   : >> { %v1025_v29 = vpop.f32.mrf.mxu1  }
 0x61e   : > { %408 = sbr.rel (!%p406_p5) target bundleno = 353 (0x161), region = 127 }
 0x622   : >> { %v1031_v31 = vpop.f32.mrf.mxu2  }
 0x623   : > { %v1143_v31 = vmul.f32 %v1142_v21, %v2083_v11 }
 0x624   : > { %v1078_v9 = vpop.f32.mrf.mxu1 }
 0x625   : > { %v1126_v3 = vmul.f32 2.0, %v1078_v9  ;;  %v1145_v42 = vsel %vm1144_vm5, %v2083_v11, %v1143_v31 }
 0x626   : > { %v1148_v1 = vsel %vm1146_vm6, %v1147_v32, %v1145_v42 }
 0x627   : > { %v1129_v17 = vsub.f32 %v1123_v8, %v1126_v3 }
 0x629   : > { %v2085_v43 = vmax.f32 %v1129_v17, 0.0 }
 0x62a   : > { %v1101_v22 = vpop.f32.mrf.mxu2 }
 0x62b   : > { %1684 = vrsqrt.f32 %v2085_v43  ;;  %v1127_v48 = vmul.f32 2.0, %v1101_v22  ;;  %vm1156_vm9 = vcmp.eq.f32.partialorder %v2085_v43, inf  ;;  %vm1158_vm10 = vcmp.eq.f32.partialorder %v2085_v43, 0.0 }
 0x62c   : > { %v1255_v52 = vpop.f32.mrf.mxu1  ;;  %v1159_v35 = vand.u32 2147483648, %v2085_v43 }
 0x62d   : > { %v1275_v54 = vmul.f32 2.0, %v1255_v52  ;;  %v1130_v55 = vsub.f32 %v1124_v44, %v1127_v48  ;;  %v1173_v44 = vsel %vm2112_vm4, 0.0, %v1148_v1 }
 0x62e   : > { %v1177_v48 = vsel %vm1176_vm8, %v1173_v44, 0.0 }
 0x62f   : > { %v1278_v49 = vsub.f32 %v1272_v47, %v1275_v54  ;;  %v2096_v53 = vmax.f32 %v1130_v55, 0.0  ;;  %v1304_v55 = vand.u32 2147483648, %v2100_v33 }
 0x631   : > { %v2102_v26 = vmax.f32 %v1278_v49, 0.0  ;;  %v1685_v37 = vpop.eup %1684  ;;  %1686 = vrsqrt.f32 %v2096_v53  ;;  %vm1168_vm11 = vcmp.eq.f32.partialorder %v2096_v53, inf  ;;  %vm1170_vm12 = vcmp.eq.f32.partialorder %v2096_v53, 0.0 }
 0x632   : > { %1688 = vrsqrt.f32 %v2098_v56  ;;  %v1150_v58 = vmul.f32 %v1685_v37, %v2085_v43  ;;  %v1171_v3 = vand.u32 2147483648, %v2096_v53 }
 0x633   : > { %1690 = vrsqrt.f32 %v2100_v33  ;;  %vm1313_vm2 = vcmp.eq.f32.partialorder %v2102_v26, inf  ;;  %vm1315_vm3 = vcmp.eq.f32.partialorder %v2102_v26, 0.0 }
 0x634   : > { %1692 = vrsqrt.f32 %v2102_v26  ;;  %v1151_v61 = vmul.f32 %v1685_v37, %v1150_v58 }
 0x636   : > { %v1152_v63 = vmul.f32 0.5, %v1151_v61  ;;  %v1316_v61 = vand.u32 2147483648, %v2102_v26 }
 0x637   : > { %v1687_v5 = vpop.eup %1686 }
 0x638   : > { %v1689_v18 = vpop.eup %1688  ;;  %v1153_v19 = vsub.f32 1.5, %v1152_v63  ;;  %v1162_v13 = vmul.f32 %v1687_v5, %v2096_v53 }
 0x639   : > { %v1691_v20 = vpop.eup %1690  ;;  %v1283_v14 = vmul.f32 %v1689_v18, %v2098_v56 }
 0x63a   : > { %v1693_v34 = vpop.eup %1692  ;;  %v1154_v28 = vmul.f32 %v1685_v37, %v1153_v19  ;;  %v1163_v29 = vmul.f32 %v1687_v5, %v1162_v13  ;;  %v1295_v30 = vmul.f32 %v1691_v20, %v2100_v33 }
 0x63b   : > { %v1284_v38 = vmul.f32 %v1689_v18, %v1283_v14  ;;  %v1307_v36 = vmul.f32 %v1693_v34, %v2102_v26 }
 0x63c   : > { %v1155_v39 = vmul.f32 %v1154_v28, %v2085_v43  ;;  %v1164_v40 = vmul.f32 0.5, %v1163_v29  ;;  %v1296_v41 = vmul.f32 %v1691_v20, %v1295_v30 }
 0x63d   : > { %v1285_v7 = vmul.f32 0.5, %v1284_v38  ;;  %v1308_v0 = vmul.f32 %v1693_v34, %v1307_v36 }
 0x63e   : > { %v1157_v8 = vsel %vm1156_vm9, %v2085_v43, %v1155_v39  ;;  %v1165_v2 = vsub.f32 1.5, %v1164_v40  ;;  %v1297_v9 = vmul.f32 0.5, %v1296_v41  ;;  %v1337_v40 = vstv %s2038_s13 }
 0x63f   : > { %v1160_v10 = vsel %vm1158_vm10, %v1159_v35, %v1157_v8  ;;  %v1286_v4 = vsub.f32 1.5, %v1285_v7  ;;  %v1309_v15 = vmul.f32 0.5, %v1308_v0  ;;  %1339 = vst.msk [vmem:[%s224_s20] sm:$0x1] %vm1338_vm7, %v1337_v40 }
 0x640   : > { %v1166_v17 = vmul.f32 %v1687_v5, %v1165_v2  ;;  %v1174_v11 = vsel %vm2112_vm4, 0.0, %v1160_v10  ;;  %v1298_v27 = vsub.f32 1.5, %v1297_v9 }
 0x641   : > { %v1287_v22 = vmul.f32 %v1689_v18, %v1286_v4  ;;  %v1310_v43 = vsub.f32 1.5, %v1309_v15  ;;  %v1178_v50 = vsel %vm1176_vm8, %v1174_v11, 0.0 }
 0x642   : > { %v1167_v45 = vmul.f32 %v1166_v17, %v2096_v53  ;;  %v1299_v47 = vmul.f32 %v1691_v20, %v1298_v27  ;;  %v1179_v37 = vadd.f32 %v1178_v50, %v1177_v48 }
 0x643   : > { %v1288_v51 = vmul.f32 %v1287_v22, %v2098_v56  ;;  %v1311_v52 = vmul.f32 %v1693_v34, %v1310_v43 }
 0x644   : > { %v1169_v24 = vsel %vm1168_vm11, %v2096_v53, %v1167_v45  ;;  %v1300_v54 = vmul.f32 %v1299_v47, %v2100_v33 }
 0x645   : > { %v1172_v23 = vsel %vm1170_vm12, %v1171_v3, %v1169_v24  ;;  %v1290_v16 = vsel %vm1289_vm14, %v2098_v56, %v1288_v51  ;;  %v1312_v49 = vmul.f32 %v1311_v52, %v2102_v26 }
 0x646   : > { %v1175_v25 = vsel %vm2112_vm4, 0.0, %v1172_v23  ;;  %v1293_v57 = vsel %vm1291_vm15, %v1292_v46, %v1290_v16  ;;  %v1302_v53 = vsel %vm1301_vm0, %v2100_v33, %v1300_v54 }
 0x647   : > { %v1180_v58 = vsel %vm1176_vm8, %v1175_v25, 0.0  ;;  %v1305_v59 = vsel %vm1303_vm1, %v1304_v55, %v1302_v53  ;;  %v1314_v60 = vsel %vm1313_vm2, %v2102_v26, %v1312_v49  ;;  %v1318_v63 = vsel %vm2112_vm4, 0.0, %v1293_v57 }
 0x648   : > { %v1181_v62 = vadd.f32 %v1180_v58, %v1179_v37  ;;  %v1319_v56 = vsel %vm2112_vm4, 0.0, %v1305_v59  ;;  %v1317_v5 = vsel %vm1315_vm3, %v1316_v61, %v1314_v60  ;;  %v1322_v33 = vsel %vm1321_vm13, %v1318_v63, 0.0 }
 0x649   : > { %v1323_v12 = vsel %vm1321_vm13, %v1319_v56, 0.0  ;;  %v1320_v18 = vsel %vm2112_vm4, 0.0, %v1317_v5 }
 0x64a   : > { %1182 = vadd.xlane.f32.xlu0 %v1181_v62  ;;  %v1324_v19 = vadd.f32 %v1323_v12, %v1322_v33  ;;  %v1325_v13 = vsel %vm1321_vm13, %v1320_v18, 0.0 }
 0x64c   : > { %v1326_v20 = vadd.f32 %v1325_v13, %v1324_v19 }
 0x652   : > { %1327 = vadd.xlane.f32.xlu0 %v1326_v20 }
 0x6bd   : > { %v1183_v26 = vpop.xlane.xlu0 %1182 }
 0x6be   : > { %v1184_v21 = vrot.slane %v1183_v26, 4 }
 0x6c0   : > { %v1185_v32 = vadd.f32 %v1184_v21, %v1183_v26 }
 0x6c2   : > { %v1186_v14 = vrot.slane %v1185_v32, 2 }
 0x6c4   : > { %v1187_v34 = vadd.f32 %v1186_v14, %v1185_v32 }
 0x6c5   : > { %v1328_v28 = vpop.xlane.xlu0 %1327 }
 0x6c6   : > { %v1329_v29 = vrot.slane %v1328_v28, 4  ;;  %v1188_v30 = vrot.slane %v1187_v34, 1 }
 0x6c8   : > { %v1330_v31 = vadd.f32 %v1329_v29, %v1328_v28  ;;  %v1189_v35 = vadd.f32 %v1188_v30, %v1187_v34 }
 0x6ca   : > { %v1331_v6 = vrot.slane %v1330_v31, 2  ;;  %1571 = vpush %v1189_v35 }
 0x6cc   : > { %v1332_v38 = vadd.f32 %v1331_v6, %v1330_v31 }
 0x6ce   : > { %v1333_v36 = vrot.slane %v1332_v38, 1 }
 0x6d0   : > { %v1334_v39 = vadd.f32 %v1333_v36, %v1332_v38 }
 0x6d2   : > { %1573 = vpush %v1334_v39 }
 0x6fb   : > { %s1572_s18 = spop %1571 }
 0x6fc   : > { %s1191_s19 = smul.f32 0.5, %s1572_s18 }
 0x6fe   : > { %v1340_v41 = vstv %s1191_s19 }
 0x6ff   : > { %1341 = vst.msk [vmem:[%s227_s23] sm:$0x1] %vm1338_vm7, %v1340_v41 }
 0x703   : > { %s1574_s24 = spop %1573 }
 0x704   : > { %s1336_s25 = smul.f32 0.5, %s1574_s24 }
 0x706   : > { %v1342_v42 = vstv %s1336_s25 }
 0x707   : > { %1343 = vst.msk [vmem:[%s230_s26] sm:$0x1] %vm1338_vm7, %v1342_v42 }
 0x708 PF: > { %s15_s15 = sadd.s32 1, %s1740_s15  }
 0x709   : > { %p12_p6 = scmp.ge.s32.totalorder %s15_s15, 4  }
 0x70b   :  { %14 = sbr.rel (!%p12_p6) target bundleno = 1 (0x1), region = 138 }

</bundles_post_ra>
